<compile_context>
chip_gen: v6e
topology: v6e:2x2x1
jax: 0.10.0
libtpu: 0.0.40
codegen_flags: <defaults>
</compile_context>

<pallas_src>
import functools

import numpy as np
import jax
import jax.numpy as jnp
from jax.experimental import pallas as pl
from jax.experimental.pallas import tpu as pltpu


# -----------------------------------------------------------------------------
# Sinusoidal table — matches the PyTorch buffer exactly: shape (max_length, 1, D)
# -----------------------------------------------------------------------------
def build_pe_table(embedding_dim: int, max_length: int = 512,
                   dtype=jnp.float32) -> jnp.ndarray:
    position = np.arange(0, max_length, dtype=np.float32)[:, None]          # (L, 1)
    div_term = np.exp(np.arange(0, embedding_dim, 2, dtype=np.float32)
                      * (-np.log(10000.0) / embedding_dim))                 # (D/2,)
    pe = np.zeros((max_length, embedding_dim), dtype=np.float32)
    pe[:, 0::2] = np.sin(position * div_term)
    pe[:, 1::2] = np.cos(position * div_term)
    # Build directly in the target dtype so the forward pass never needs a
    # per-call slice+convert of the table.  (For low-precision dtypes this adds
    # in x.dtype rather than f32 like PyTorch; difference is <= 1 ulp of x.dtype.)
    return jnp.asarray(pe[:, None, :], dtype=dtype)                         # (L, 1, D)


# -----------------------------------------------------------------------------
# Kernels
# -----------------------------------------------------------------------------
def _pe_add_kernel_bcast(x_ref, pe_ref, o_ref):
    # x: (tS, B, D), pe: (tS, 1, D) — batch broadcast in-register; one add, one store.
    o_ref[...] = x_ref[...] + pe_ref[...]


def _pe_add_kernel_lanes(x_ref, pe_ref, o_ref, *, batch, dim):
    # x/o: (tS, batch*dim) with (b, d) merged into the lane dim (dense sublanes,
    # fully contiguous HBM<->VMEM DMA).  pe: (tS, dim), loaded once per tile.
    # One 128-aligned (tS, dim) add + store per batch element; the per-b slices
    # are static, tile-aligned views (dim % 128 == 0 guaranteed by the wrapper).
    pe_vals = pe_ref[...]
    for b in range(batch):
        sl = slice(b * dim, (b + 1) * dim)
        o_ref[:, sl] = x_ref[:, sl] + pe_vals


# -----------------------------------------------------------------------------
# Tiling heuristics (layout-aware)
# -----------------------------------------------------------------------------
_DEFAULT_TILE_BYTES = 6 * 1024 * 1024     # per x tile (good for v5e/v6e/v7x)
_VMEM_LIMIT_BYTES = 48 * 1024 * 1024      # 2*(x+out) + 2*pe ~ 30 MiB < 48 < 64 (v7x)
_XLA_FASTPATH_BYTES = 4 * 1024 * 1024     # below this, pallas_call overhead dominates


def _round_up(v: int, m: int) -> int:
    return ((v + m - 1) // m) * m


def _choose_seq_tile(S: int, padded_row_bytes: int,
                     target_bytes: int = _DEFAULT_TILE_BYTES) -> int:
    """Sequence positions per block given the *padded* VMEM bytes per position."""
    ts = max(1, target_bytes // padded_row_bytes)
    if ts >= S:
        return S                              # single full-extent block
    ts = max(8, (ts // 8) * 8)                # keep block boundaries 8-aligned
    return int(min(ts, S))


# -----------------------------------------------------------------------------
# Forward: x (S, B, D) + pe[:S] (broadcast over B)
# -----------------------------------------------------------------------------
def fixed_positional_encoding(x: jnp.ndarray, pe_table: jnp.ndarray, *,
                              target_tile_bytes: int = _DEFAULT_TILE_BYTES,
                              donate_x: bool = False,
                              force_pallas: bool = False) -> jnp.ndarray:
    S, B, D = x.shape
    max_length = pe_table.shape[0]
    assert S <= max_length, f"sequence length {S} exceeds max_length {max_length}"
    assert pe_table.shape[2] == D, "embedding_dim mismatch between x and pe table"

    pe_slice = pe_table[:S]                                   # (S, 1, D) static slice
    if pe_slice.dtype != x.dtype:
        pe_slice = pe_slice.astype(x.dtype)                   # avoided if table built in x.dtype

    itemsize = x.dtype.itemsize
    if (S * B * D * itemsize < _XLA_FASTPATH_BYTES) and not force_pallas:
        # Tiny shapes: a fused XLA broadcast-add beats any pallas_call overhead.
        return x + pe_slice

    alias = {0: 0} if donate_x else {}
    cparams = pltpu.CompilerParams(
        dimension_semantics=("parallel",),                    # independent seq tiles
        vmem_limit_bytes=_VMEM_LIMIT_BYTES,
    )

    if B % 8 != 0 and D % 128 == 0:
        # ---- Dense small-batch path: merge (B, D) into the lane dim ----------
        # Free reshapes (contiguous trailing dims).  Sublanes = sequence (dense),
        # lanes = B*D (multiple of 128) -> unmasked wide stores, contiguous DMA.
        x2 = x.reshape(S, B * D)
        pe2 = pe_slice.reshape(S, D)
        row_bytes = B * D * itemsize                          # already lane-aligned
        tS = _choose_seq_tile(S, row_bytes, target_tile_bytes)
        out2 = pl.pallas_call(
            functools.partial(_pe_add_kernel_lanes, batch=B, dim=D),
            out_shape=jax.ShapeDtypeStruct((S, B * D), x.dtype),
            grid=(pl.cdiv(S, tS),),
            in_specs=[
                pl.BlockSpec((tS, B * D), lambda i: (i, 0)),
                pl.BlockSpec((tS, D), lambda i: (i, 0)),      # pe traffic stays ~S*D
            ],
            out_specs=pl.BlockSpec((tS, B * D), lambda i: (i, 0)),
            compiler_params=cparams,
            input_output_aliases=alias,
        )(x2, pe2)
        return out2.reshape(S, B, D)

    # ---- Broadcast path: (tS, B, D) + (tS, 1, D) -----------------------------
    # Dense when B % 8 == 0; for B % 8 != 0 with unaligned D this is correct but
    # pads (B, D) slices to (8, 128) — the padded footprint is what we budget.
    row_bytes = _round_up(B, 8) * _round_up(D, 128) * itemsize
    tS = _choose_seq_tile(S, row_bytes, target_tile_bytes)
    return pl.pallas_call(
        _pe_add_kernel_bcast,
        out_shape=jax.ShapeDtypeStruct((S, B, D), x.dtype),
        grid=(pl.cdiv(S, tS),),
        in_specs=[
            pl.BlockSpec((tS, B, D), lambda i: (i, 0, 0)),
            pl.BlockSpec((tS, 1, D), lambda i: (i, 0, 0)),    # pe fetched once per S-tile
        ],
        out_specs=pl.BlockSpec((tS, B, D), lambda i: (i, 0, 0)),
        compiler_params=cparams,
        input_output_aliases=alias,
    )(x, pe_slice)


# -----------------------------------------------------------------------------
# Self-test
# -----------------------------------------------------------------------------
if __name__ == "__main__":
    MAX_LEN = 512
    key = jax.random.PRNGKey(0)
    k1, k2, k3 = jax.random.split(key, 3)

    def ref(x, pe_table):
        return x + pe_table[: x.shape[0]].astype(x.dtype)

    # 1) Module-shaped toy input (seq=8, batch=2, hidden=32).  D % 128 != 0, so
    #    this takes the broadcast path; force_pallas so the kernel itself runs.
    S, B, D = 8, 2, 32
    pe = build_pe_table(D, MAX_LEN)
    x = jax.random.normal(k1, (S, B, D), dtype=jnp.float32)
    out = jax.block_until_ready(fixed_positional_encoding(x, pe, force_pallas=True))
    np.testing.assert_allclose(np.asarray(out), np.asarray(ref(x, pe)),
                               rtol=1e-6, atol=1e-6)

    # 2) Small-batch dense (lane-merged) path: B=2, D=128, multi-tile grid with a
    #    ragged tail (tiny tile target just to exercise the pipelined grid).
    S, B, D = 20, 2, 128
    pe = build_pe_table(D, MAX_LEN)
    x = jax.random.normal(k2, (S, B, D), dtype=jnp.float32)
    out = jax.block_until_ready(
        fixed_positional_encoding(x, pe, target_tile_bytes=8 * 1024,
                                  force_pallas=True))
    np.testing.assert_allclose(np.asarray(out), np.asarray(ref(x, pe)),
                               rtol=1e-6, atol=1e-6)

    # 3) Sublane-aligned batch (B % 8 == 0): native (tS, B, D) broadcast path,
    #    multi-tile grid.
    S, B, D = 32, 8, 128
    pe = build_pe_table(D, MAX_LEN)
    x = jax.random.normal(k3, (S, B, D), dtype=jnp.float32)
    out = jax.block_until_ready(
        fixed_positional_encoding(x, pe, target_tile_bytes=32 * 1024,
                                  force_pallas=True))
    np.testing.assert_allclose(np.asarray(out), np.asarray(ref(x, pe)),
                               rtol=1e-6, atol=1e-6)

    print("KERNEL_OK")
</pallas_src>

<mosaic_0001>
module attributes {stable_mosaic.version = 11 : i64} {
  func.func @_pe_add_kernel_bcast(%arg0: i32, %arg1: memref<8x2x32xf32, #tpu.memory_space<vmem>>, %arg2: memref<8x1x32xf32, #tpu.memory_space<vmem>>, %arg3: memref<8x2x32xf32, #tpu.memory_space<vmem>>) attributes {dimension_semantics = [#tpu.dimension_semantics<parallel>], iteration_bounds = array<i64: 1>, scalar_prefetch = 0 : i64, scratch_operands = 0 : i64, tpu.core_type = #tpu.core_type<tc>, window_params = [{transform_indices = @transform_0, window_bounds = array<i64: 8, 2, 32>}, {transform_indices = @transform_1, window_bounds = array<i64: 8, 1, 32>}, {transform_indices = @transform_2, window_bounds = array<i64: 8, 2, 32>}]} {
    %c0 = arith.constant 0 : index
    %c0_0 = arith.constant 0 : index
    %c0_1 = arith.constant 0 : index
    %0 = vector.load %arg1[%c0, %c0_0, %c0_1] : memref<8x2x32xf32, #tpu.memory_space<vmem>>, vector<8x2x32xf32>
    %c0_2 = arith.constant 0 : index
    %c0_3 = arith.constant 0 : index
    %c0_4 = arith.constant 0 : index
    %1 = vector.load %arg2[%c0_2, %c0_3, %c0_4] : memref<8x1x32xf32, #tpu.memory_space<vmem>>, vector<8x1x32xf32>
    %2 = vector.broadcast %1 : vector<8x1x32xf32> to vector<8x2x32xf32>
    %3 = arith.addf %0, %2 : vector<8x2x32xf32>
    %c0_5 = arith.constant 0 : index
    %c0_6 = arith.constant 0 : index
    %c0_7 = arith.constant 0 : index
    %4 = vector.load %arg3[%c0_5, %c0_6, %c0_7] : memref<8x2x32xf32, #tpu.memory_space<vmem>>, vector<8x2x32xf32>
    tpu.vector_store %arg3[%c0_5, %c0_6, %c0_7], %3 {strides = array<i32>} : memref<8x2x32xf32, #tpu.memory_space<vmem>>, vector<8x2x32xf32>,
    return
  }
  func.func @transform_0(%arg0: i32) -> (i32, i32, i32) {
    %c0_i32 = arith.constant 0 : i32
    %c0_i32_0 = arith.constant 0 : i32
    %c0_i32_1 = arith.constant 0 : i32
    return %arg0, %c0_i32, %c0_i32_0 : i32, i32, i32
  }
  func.func @transform_1(%arg0: i32) -> (i32, i32, i32) {
    %c0_i32 = arith.constant 0 : i32
    %c0_i32_0 = arith.constant 0 : i32
    %c0_i32_1 = arith.constant 0 : i32
    return %arg0, %c0_i32, %c0_i32_0 : i32, i32, i32
  }
  func.func @transform_2(%arg0: i32) -> (i32, i32, i32) {
    %c0_i32 = arith.constant 0 : i32
    %c0_i32_0 = arith.constant 0 : i32
    %c0_i32_1 = arith.constant 0 : i32
    return %arg0, %c0_i32, %c0_i32_0 : i32, i32, i32
  }
}

</mosaic_0001>

<bundles_post_ra>
// kernel: tpu_custom_call.1
= control target key start
LH: loop header
LB: loop body
LE: loop exit
PB: predicated region body
PF: predicated region fallthrough
CT: control target
= control target key end

     0   :  { %7 = vsyncpa [#allocation3], 0  ;;  %s268_s0 = inlined_call_operand.hbm [shape: f32[8,2,32], index: 0, kind: input, shape index: {}]   ;;  %s269_s1 = inlined_call_operand.hbm [shape: f32[8,1,32], index: 1, kind: input, shape index: {}]   ;;  %s270_s2 = inlined_call_operand.hbm [shape: f32[8,2,32], index: 2, kind: output, shape index: {}]  }
   0x1   :  { %8 = vsyncpa [#allocation6], 0 }
   0x2   :  { %9 = vsyncpa [#allocation4], 0  ;;  %s220_s9 = smov [#allocation2]  }
   0x3   :  { %s15_s10 = sshll.u32 %s220_s9, 4  ;;  %s16_s10 = int_to_ptr.vmem [resolvable:$true] %s15_s10 }
   0x4   :  { %s162_s11 = scalar_lea.vmem %s16_s10, 256  ;;  %p167_p1 = scmp.lt.s32.totalorder %s16_s10, %s16_s10 }
   0x5   :  { %p163_p0 = scmp.ne.s32.totalorder %s16_s10, %s162_s11  ;;  %p168_p2 = scmp.lt.s32.totalorder %s162_s11, %s162_s11 }
   0x7   :  { %p169_p3 = por %p168_p2, %p167_p1 }
   0x9   :  { %p170_p4 = pnand %p169_p3, %p163_p0 }
   0xb   :  { %173 = shalt.err (!%p170_p4)
}
   0xc   :  { %s221_s12 = smov 32   ;;  %s222_s13 = smov 2  }
   0xd   :  { %21 = dma.hbm_to_vmem [thread:$0]  %s268_s0, 256, %s16_s10, [#allocation3], %s221_s12, %s221_s12, %s222_s13  }
   0xe   :  { %s223_s16 = smov [#allocation5]  }
   0xf   :  { %s27_s17 = sshll.u32 %s223_s16, 4  ;;  %s28_s17 = int_to_ptr.vmem [resolvable:$true] %s27_s17 }
  0x10   :  { %s182_s18 = scalar_lea.vmem %s28_s17, 128  ;;  %p187_p6 = scmp.lt.s32.totalorder %s28_s17, %s28_s17 }
  0x11   :  { %p183_p5 = scmp.ne.s32.totalorder %s28_s17, %s182_s18  ;;  %p188_p7 = scmp.lt.s32.totalorder %s182_s18, %s182_s18 }
  0x13   :  { %p189_p8 = por %p188_p7, %p187_p6 }
  0x15   :  { %p190_p9 = pnand %p189_p8, %p183_p5 }
  0x17   :  { %193 = shalt.err (!%p190_p9)
}
  0x18   :  { %s224_s19 = smov 16   ;;  %s225_s20 = smov 1  }
  0x19   :  { %33 = dma.hbm_to_vmem [thread:$0]  %s269_s1, 128, %s28_s17, [#allocation6], %s224_s19, %s224_s19, %s225_s20  }
  0x1a   :  { %214 = dma.done.wait [#allocation3], 256  }
  0x1b   :  { %215 = vsyncadd [#allocation3], 4294967040 }
  0x1c   :  { %216 = dma.done.wait [#allocation6], 128  }
  0x1d   :  { %217 = vsyncadd [#allocation6], 4294967168  ;;  %vm112_vm0 = vcmask 254976   ;;  %s226_s0 = smov [#allocation7]   ;;  %v40_v0 = vld [vmem:[#allocation2] sm:$0x3] }
  0x1e   :  { %s251_s23 = sshll.u32 %s226_s0, 4  ;;  %v139_v1 = vld [vmem:[#allocation5] ss:$0 sm:$0xff]  ;;  %v41_v2 = vld [vmem:[#allocation2 + $0x2] sm:$0x3]  ;;  %s127_s23 = int_to_ptr.vmem [resolvable:$true] %s251_s23 }
  0x1f   :  { %v104_v3 = vadd.f32 %v139_v1, %v40_v0  ;;  %v140_v4 = vld [vmem:[#allocation5 + $0x1] ss:$0 sm:$0xff]  ;;  %v42_v5 = vld [vmem:[#allocation2 + $0x4] sm:$0x3]  ;;  %v141_v6 = vld [vmem:[#allocation5 + $0x2] ss:$0 sm:$0xff]  ;;  %p199_p11 = scmp.lt.s32.totalorder %s127_s23, %s127_s23 }
  0x20   :  { %v105_v7 = vadd.f32 %v140_v4, %v41_v2  ;;  %v106_v8 = vadd.f32 %v141_v6, %v42_v5  ;;  %v43_v9 = vld [vmem:[#allocation2 + $0x6] sm:$0x3]  ;;  %v142_v10 = vld [vmem:[#allocation5 + $0x3] ss:$0 sm:$0xff]  ;;  %v44_v11 = vld [vmem:[#allocation2 + $0x8] sm:$0x3] }
  0x21   :  { %113 = vst.msk [vmem:[#allocation7] sm:$0x3] %vm112_vm0, %v104_v3  ;;  %v107_v12 = vadd.f32 %v142_v10, %v43_v9  ;;  %v143_v13 = vld [vmem:[#allocation5 + $0x4] ss:$0 sm:$0xff]  ;;  %v45_v14 = vld [vmem:[#allocation2 + $0xa] sm:$0x3] }
  0x22   :  { %v144_v15 = vld [vmem:[#allocation5 + $0x5] ss:$0 sm:$0xff]  ;;  %114 = vst.msk [vmem:[#allocation7 + $0x2] sm:$0x3] %vm112_vm0, %v105_v7  ;;  %115 = vst.msk [vmem:[#allocation7 + $0x4] sm:$0x3] %vm112_vm0, %v106_v8  ;;  %v108_v16 = vadd.f32 %v143_v13, %v44_v11 }
  0x23   :  { %v109_v17 = vadd.f32 %v144_v15, %v45_v14  ;;  %v46_v18 = vld [vmem:[#allocation2 + $0xc] sm:$0x3]  ;;  %v145_v19 = vld [vmem:[#allocation5 + $0x6] ss:$0 sm:$0xff]  ;;  %v47_v20 = vld [vmem:[#allocation2 + $0xe] sm:$0x3] }
  0x24   :  { %116 = vst.msk [vmem:[#allocation7 + $0x6] sm:$0x3] %vm112_vm0, %v107_v12  ;;  %v110_v21 = vadd.f32 %v145_v19, %v46_v18  ;;  %v146_v22 = vld [vmem:[#allocation5 + $0x7] ss:$0 sm:$0xff]  ;;  %117 = vst.msk [vmem:[#allocation7 + $0x8] sm:$0x3] %vm112_vm0, %v108_v16 }
  0x25   :  { %118 = vst.msk [vmem:[#allocation7 + $0xa] sm:$0x3] %vm112_vm0, %v109_v17  ;;  %v111_v23 = vadd.f32 %v146_v22, %v47_v20  ;;  %s194_s1 = scalar_lea.vmem %s127_s23, 256 }
  0x26   :  { %119 = vst.msk [vmem:[#allocation7 + $0xc] sm:$0x3] %vm112_vm0, %v110_v21  ;;  %p195_p10 = scmp.ne.s32.totalorder %s127_s23, %s194_s1  ;;  %p200_p12 = scmp.lt.s32.totalorder %s194_s1, %s194_s1 }
  0x27   :  { %120 = vst.msk [vmem:[#allocation7 + $0xe] sm:$0x3] %vm112_vm0, %v111_v23 }
  0x28   :  { %p201_p13 = por %p200_p12, %p199_p11 }
  0x2a   :  { %p202_p0 = pnand %p201_p13, %p195_p10 }
  0x2c   :  { %205 = shalt.err (!%p202_p0)
}
  0x2d   :  { %132 = dma.vmem_to_hbm [thread:$0]  %s127_s23, 256, %s270_s2, [#allocation4], %s221_s12, %s221_s12, %s222_s13  }
  0x2e   :  { %218 = dma.done.wait [#allocation4], 256  }
  0x2f   :  { %219 = vsyncadd [#allocation4], 4294967040 }
  0x30   :  { %136 = vsyncpa [#allocation3], 1 }
  0x31   :  { %137 = vsyncpa [#allocation6], 1 }
  0x32   :  { %138 = vsyncpa [#allocation4], 1 }

</bundles_post_ra>
